<compile_context>
chip_gen: v5e
topology: v5e:2x2
jax: 0.10.0
libtpu: 0.0.40
codegen_flags: <defaults>
</compile_context>

<pallas_src>
import math

import jax
import jax.numpy as jnp
from jax.experimental import pallas as pl
from jax.experimental.pallas import tpu as pltpu


def _round_up(x, m):
    return ((x + m - 1) // m) * m


def _vmem_bytes(shape, itemsize):
    """Rough VMEM footprint of one buffer holding `shape` (lane/sublane padded)."""
    dims = list(shape)
    dims[-1] = _round_up(dims[-1], 128)
    if len(dims) >= 2:
        sublane = {4: 8, 2: 16, 1: 32}.get(itemsize, 8)
        dims[-2] = _round_up(dims[-2], sublane)
    n = 1
    for d in dims:
        n *= d
    return n * itemsize


def _make_kernel(num_edge_layers, cin, o_pad, stream_dtype):
    """Builds the kernel for a fixed number of edge-MLP layers."""

    def kernel(*refs):
        node_ref, nmask_hbm, eattr_ref, emask_ref = refs[:4]
        edge_w_refs = refs[4:4 + num_edge_layers]
        wc_ref, root_ref, bias_ref, out_ref = refs[4 + num_edge_layers:
                                                   8 + num_edge_layers]
        g_acc, nmask_vmem, nmask_sem = refs[8 + num_edge_layers:]

        p = pl.program_id(0)          # parallel split of the edge reduction
        t = pl.program_id(1)          # edge-tile reduction axis (pipelined)

        @pl.when(t == 0)
        def _init():
            g_acc[...] = jnp.zeros_like(g_acc)
            # node_mask is only needed in the finalize step: start its one-time
            # DMA now (single VMEM copy, no double buffering) so the transfer
            # overlaps the whole edge reduction.
            pltpu.make_async_copy(nmask_hbm, nmask_vmem, nmask_sem).start()

        # --- edge MLP on this tile of edges (ReLU after every layer, no bias,
        #     matching `edge_attr = torch.mm(edge_attr, layer).clamp(min=0)`).
        #     Streamed in `stream_dtype`; compute in fp32.
        h = eattr_ref[...].astype(jnp.float32)                   # [TE, Ce]
        for w_ref in edge_w_refs:
            h = jnp.maximum(
                jnp.dot(h, w_ref[...], preferred_element_type=jnp.float32),
                0.0)

        # G[n, d] += sum_{e in tile} edge_mask[n, e] * h[e, d]
        g_acc[...] += jnp.dot(emask_ref[...], h.astype(stream_dtype),
                              preferred_element_type=jnp.float32)  # [N, D]

        @pl.when(t == pl.num_programs(1) - 1)
        def _finalize():
            pltpu.make_async_copy(nmask_hbm, nmask_vmem, nmask_sem).wait()
            node = node_ref[...]                                   # [N, Cin]
            # T[n, c*O_p + o] = sum_d G[n, d] * W_out[c, d, o]
            t_all = jnp.dot(g_acc[...], wc_ref[...],
                            preferred_element_type=jnp.float32)    # [N, Cin*O_p]
            # S[n, o] = sum_c node[n, c] * T[n, c*O_p + o]
            s = node[:, 0:1] * t_all[:, 0:o_pad]
            for c in range(1, cin):   # static Python loop, Cin is small
                s = s + node[:, c:c + 1] * t_all[:, c * o_pad:(c + 1) * o_pad]
            messages = jnp.dot(nmask_vmem[...].astype(jnp.float32), s,
                               preferred_element_type=jnp.float32)  # [N, O_p]
            root_bias = jnp.dot(node, root_ref[...],
                                preferred_element_type=jnp.float32) + bias_ref[...]
            # root/bias contribution added exactly once (by partition p == 0);
            # the wrapper sums the per-partition partial outputs.
            out_ref[...] = (messages
                            + jnp.where(p == 0, 1.0, 0.0) * root_bias
                            ).astype(out_ref.dtype)

    return kernel


def sparse_node_edge_conv(node_attr, edge_attr, node_mask, edge_mask,
                          edge_net_weights, edge_net_out_weight, root, bias,
                          *, edge_tile=1024, stream_dtype=jnp.bfloat16,
                          core_splits=2, vmem_budget_bytes=44 * 1024 * 1024):
    N, cin = node_attr.shape
    E, ce = edge_attr.shape
    d_last = edge_net_weights[-1].shape[1]
    o = edge_net_out_weight.shape[2]
    assert edge_net_out_weight.shape == (cin, d_last, o)
    assert node_mask.shape == (N, N) and edge_mask.shape == (N, E)
    if bias is None:
        bias = jnp.zeros((o,), jnp.float32)

    lane = 128
    o_pad = _round_up(o, lane)                     # lane-dense output / T slices
    stream_itemsize = jnp.dtype(stream_dtype).itemsize
    w_shapes = [tuple(w.shape) for w in edge_net_weights]

    # ---- choose the edge tile (as large as the VMEM budget allows) ----------
    e128 = _round_up(E, lane)
    te = max(lane, (min(edge_tile, e128) // lane) * lane)

    fixed_vmem = (2 * (_vmem_bytes((N, cin), 4)
                       + _vmem_bytes((d_last, cin * o_pad), 4)
                       + _vmem_bytes((cin, o_pad), 4)
                       + _vmem_bytes((1, o_pad), 4)
                       + _vmem_bytes((N, o_pad), 4)
                       + sum(_vmem_bytes(s, 4) for s in w_shapes))
                  + _vmem_bytes((N, d_last), 4)
                  + _vmem_bytes((N, N), node_mask.dtype.itemsize))

    def stream_vmem(te_):   # double-buffered streamed tiles
        return 2 * (_vmem_bytes((te_, ce), stream_itemsize)
                    + _vmem_bytes((N, te_), stream_itemsize))

    stream_budget = max(vmem_budget_bytes - fixed_vmem, 2 * 1024 * 1024)
    while stream_vmem(te) > stream_budget and te > lane:
        te = max(lane, (te // 2) // lane * lane)

    # ---- parallel split of the edge reduction (2nd TensorCore on v7x) -------
    if e128 <= te:
        te, P = e128, 1                            # single-tile fast path
    else:
        P = core_splits if (core_splits > 1 and N % 8 == 0) else 1
    e_pad = _round_up(E, P * te)
    tiles_per_p = (e_pad // te) // P

    # ---- pad / cast streamed arrays and O-bearing parameters ----------------
    # bf16 streaming halves HBM traffic; edge_mask is 0/1 so exact in bf16;
    # all compute / accumulation stays fp32 inside the kernel.
    edge_attr_p = edge_attr.astype(stream_dtype)
    edge_mask_p = edge_mask.astype(stream_dtype)
    if e_pad != E:
        edge_attr_p = jnp.pad(edge_attr_p, ((0, e_pad - E), (0, 0)))
        edge_mask_p = jnp.pad(edge_mask_p, ((0, 0), (0, e_pad - E)))

    # Fold edge_net_out_weight [Cin, D, O] into Wc [D, Cin*O_p] with
    # Wc[d, c*O_p + o] = W[c, d, o]; zero-pad O-bearing params to o_pad.
    w_out_p = jnp.pad(edge_net_out_weight, ((0, 0), (0, 0), (0, o_pad - o)))
    wc = jnp.transpose(w_out_p, (1, 0, 2)).reshape(d_last, cin * o_pad)
    root_p = jnp.pad(root, ((0, 0), (0, o_pad - o)))
    bias_p = jnp.pad(bias, (0, o_pad - o)).reshape(1, o_pad)

    const = lambda shape: pl.BlockSpec(shape, lambda p, t: (0, 0))
    in_specs = [
        const((N, cin)),                                  # node_attr (resident)
        pl.BlockSpec(memory_space=pl.ANY),                # node_mask: manual DMA
        pl.BlockSpec((te, ce), lambda p, t: (p * tiles_per_p + t, 0)),  # edge_attr
        pl.BlockSpec((N, te), lambda p, t: (0, p * tiles_per_p + t)),   # edge_mask
    ]
    in_specs += [const(s) for s in w_shapes]
    in_specs += [const(wc.shape), const(root_p.shape), const(bias_p.shape)]

    kernel = _make_kernel(len(edge_net_weights), cin, o_pad, stream_dtype)

    # Advisory cost for XLA scheduling around the call.
    mlp_dims = [ce] + [s[1] for s in w_shapes]
    mlp_flops = sum(2 * a * b for a, b in zip(mlp_dims[:-1], mlp_dims[1:]))
    flops = (e_pad * (mlp_flops + 2 * N * d_last)
             + 2 * N * d_last * cin * o_pad + 3 * N * cin * o_pad
             + 2 * N * N * o_pad)
    bytes_accessed = (e_pad * (ce + N) * stream_itemsize
                      + N * N * node_mask.dtype.itemsize
                      + N * cin * 4
                      + sum(a * b for a, b in zip(mlp_dims[:-1], mlp_dims[1:])) * 4
                      + (d_last * cin * o_pad + cin * o_pad + o_pad) * 4
                      + P * N * o_pad * 4)

    est = fixed_vmem + stream_vmem(te)
    vmem_limit = int(min(96 * 1024 * 1024,
                         max(32 * 1024 * 1024, est + est // 4 + (1 << 20))))

    out = pl.pallas_call(
        kernel,
        out_shape=jax.ShapeDtypeStruct((P * N, o_pad), jnp.float32),
        grid_spec=pltpu.PrefetchScalarGridSpec(
            num_scalar_prefetch=0,
            grid=(P, tiles_per_p),
            in_specs=in_specs,
            out_specs=pl.BlockSpec((N, o_pad), lambda p, t: (p, 0)),
            scratch_shapes=[
                pltpu.VMEM((N, d_last), jnp.float32),      # G accumulator
                pltpu.VMEM((N, N), node_mask.dtype),       # node_mask (1 copy)
                pltpu.SemaphoreType.DMA(()),
            ],
        ),
        compiler_params=pltpu.CompilerParams(
            dimension_semantics=("parallel", "arbitrary"),
            vmem_limit_bytes=vmem_limit),
        cost_estimate=pl.CostEstimate(flops=int(flops), transcendentals=0,
                                      bytes_accessed=int(bytes_accessed)),
    )(node_attr, node_mask, edge_attr_p, edge_mask_p,
      *edge_net_weights, wc, root_p, bias_p)

    # Sum the per-partition partials and slice back from the lane padding.
    return out.reshape(P, N, o_pad).sum(axis=0)[:, :o]


def reference(node_attr, edge_attr, node_mask, edge_mask,
              edge_net_weights, edge_net_out_weight, root, bias):
    """Pure-JAX literal mirror of the PyTorch forward (correctness check)."""
    root_info = node_attr @ root
    h = edge_attr
    for w in edge_net_weights:
        h = jnp.maximum(h @ w, 0.0)
    # torch.matmul(h, W) -> [Cin, E, O]; .permute(1, 0, 2) -> [E, Cin, O]
    edge_out = jnp.einsum('ed,cdo->eco', h, edge_net_out_weight)
    # torch.matmul(node_attr, edge_out) -> [E, N, O]
    edge_out = jnp.einsum('nc,eco->eno', node_attr, edge_out)
    edge_out = edge_mask.T[:, :, None] * edge_out
    edge_out = edge_out.sum(axis=0)                                # [N, O]
    messages = node_mask @ edge_out
    return messages + root_info + bias


if __name__ == "__main__":
    # Small shapes consistent with the module.
    N = 16              # number of nodes
    CIN = 8             # node_in_channels
    CE = 16             # edge_in_channels
    EDGE_DIMS = (16, 8)  # edge_net_output_dims
    COUT = 8            # out_channels
    E = 520             # number of (sparse) edges -> exercises tile padding

    key = jax.random.PRNGKey(0)
    keys = jax.random.split(key, 10)

    node_attr = jax.random.normal(keys[0], (N, CIN), dtype=jnp.float32)
    edge_attr = jax.random.normal(keys[1], (E, CE), dtype=jnp.float32)
    node_mask = (jax.random.uniform(keys[2], (N, N)) > 0.5).astype(jnp.float32)
    edge_mask = (jax.random.uniform(keys[3], (N, E)) > 0.5).astype(jnp.float32)

    # Deterministic parameter init mimicking reset_parameters().
    node_stdv = 1.0 / math.sqrt(COUT)
    root = jax.random.uniform(keys[4], (CIN, COUT), minval=-node_stdv,
                              maxval=node_stdv, dtype=jnp.float32)
    edge_net = []
    prev = CE
    for i, d in enumerate(EDGE_DIMS):
        e_stdv = 1.0 / math.sqrt(d)
        edge_net.append(jax.random.uniform(keys[5 + i], (prev, d),
                                           minval=-e_stdv, maxval=e_stdv,
                                           dtype=jnp.float32))
        prev = d
    filt_stdv = 1.0 / math.sqrt(CIN * COUT)
    w_out = jax.random.uniform(keys[7], (CIN, EDGE_DIMS[-1], COUT),
                               minval=-filt_stdv, maxval=filt_stdv,
                               dtype=jnp.float32)
    bias = jax.random.uniform(keys[8], (COUT,), minval=-node_stdv,
                              maxval=node_stdv, dtype=jnp.float32)

    args = (node_attr, edge_attr, node_mask, edge_mask, edge_net, w_out, root, bias)
    ref = reference(*args)

    # (a) exact-precision path, small tile: multi-tile pipelined reduction plus
    #     2-way parallel split (exercises init/accumulate/finalize + partials).
    out_a = jax.block_until_ready(
        sparse_node_edge_conv(*args, stream_dtype=jnp.float32, edge_tile=128))
    assert out_a.shape == (N, COUT)
    assert jnp.allclose(out_a, ref, rtol=1e-3, atol=1e-3), (
        f"f32 multi-tile mismatch, max abs err = {jnp.max(jnp.abs(out_a - ref))}")

    # (b) exact-precision path, single-tile fast path (grid = (1, 1)).
    out_b = jax.block_until_ready(
        sparse_node_edge_conv(*args, stream_dtype=jnp.float32))
    assert jnp.allclose(out_b, ref, rtol=1e-3, atol=1e-3), (
        f"f32 single-tile mismatch, max abs err = {jnp.max(jnp.abs(out_b - ref))}")

    # (c) default performance path: bf16 streaming of edge_attr / edge_mask
    #     (fp32 accumulation) -> slightly looser elementwise tolerance.
    out_c = jax.block_until_ready(sparse_node_edge_conv(*args))
    rel = jnp.linalg.norm(out_c - ref) / jnp.linalg.norm(ref)
    assert jnp.allclose(out_c, ref, rtol=2e-2, atol=1e-1) and rel < 5e-3, (
        f"bf16 mismatch, rel norm err = {rel}")

    print("KERNEL_OK")
</pallas_src>

<mosaic_0001>
module attributes {stable_mosaic.version = 11 : i64} {
  func.func @kernel(%arg0: i32, %arg1: i32, %arg2: memref<16x8xf32, #tpu.memory_space<vmem>>, %arg3: memref<16x16xf32, #tpu.memory_space<any>>, %arg4: memref<128x16xf32, #tpu.memory_space<vmem>>, %arg5: memref<16x128xf32, #tpu.memory_space<vmem>>, %arg6: memref<16x16xf32, #tpu.memory_space<vmem>>, %arg7: memref<16x8xf32, #tpu.memory_space<vmem>>, %arg8: memref<8x1024xf32, #tpu.memory_space<vmem>>, %arg9: memref<8x128xf32, #tpu.memory_space<vmem>>, %arg10: memref<1x128xf32, #tpu.memory_space<vmem>>, %arg11: memref<16x128xf32, #tpu.memory_space<vmem>>, %arg12: memref<16x8xf32, #tpu.memory_space<vmem>>, %arg13: memref<16x16xf32, #tpu.memory_space<vmem>>, %arg14: memref<!tpu.dma_semaphore, #tpu.memory_space<semaphore_mem>>) attributes {dimension_semantics = [#tpu.dimension_semantics<parallel>, #tpu.dimension_semantics<arbitrary>], iteration_bounds = array<i64: 2, 3>, scalar_prefetch = 0 : i64, scratch_operands = 3 : i64, tpu.core_type = #tpu.core_type<tc>, window_params = [{pipeline_mode = #tpu.pipeline_mode<synchronous>, transform_indices = @transform_0, window_bounds = array<i64: 16, 8>}, {}, {transform_indices = @transform_2, window_bounds = array<i64: 128, 16>}, {transform_indices = @transform_3, window_bounds = array<i64: 16, 128>}, {pipeline_mode = #tpu.pipeline_mode<synchronous>, transform_indices = @transform_4, window_bounds = array<i64: 16, 16>}, {pipeline_mode = #tpu.pipeline_mode<synchronous>, transform_indices = @transform_5, window_bounds = array<i64: 16, 8>}, {pipeline_mode = #tpu.pipeline_mode<synchronous>, transform_indices = @transform_6, window_bounds = array<i64: 8, 1024>}, {pipeline_mode = #tpu.pipeline_mode<synchronous>, transform_indices = @transform_7, window_bounds = array<i64: 8, 128>}, {pipeline_mode = #tpu.pipeline_mode<synchronous>, transform_indices = @transform_8, window_bounds = array<i64: 1, 128>}, {transform_indices = @transform_9, window_bounds = array<i64: 16, 128>}]} {
    %c0_i32 = arith.constant 0 : i32
    %0 = arith.cmpi eq, %arg1, %c0_i32 : i32
    %1 = arith.extui %0 : i1 to i32
    %c0_i32_0 = arith.constant 0 : i32
    %2 = arith.cmpi ne, %1, %c0_i32_0 : i32
    scf.if %2 {
      %cst_17 = arith.constant 0.000000e+00 : f32
      %20 = vector.broadcast %cst_17 : f32 to vector<16x8xf32>
      %c0_18 = arith.constant 0 : index
      %c0_19 = arith.constant 0 : index
      %21 = vector.load %arg12[%c0_18, %c0_19] : memref<16x8xf32, #tpu.memory_space<vmem>>, vector<16x8xf32>
      tpu.vector_store %arg12[%c0_18, %c0_19], %20 {strides = array<i32>} : memref<16x8xf32, #tpu.memory_space<vmem>>, vector<16x8xf32>,
      tpu.enqueue_dma source(%arg3 : memref<16x16xf32, #tpu.memory_space<any>>) target(%arg13 : memref<16x16xf32, #tpu.memory_space<vmem>>) target_semaphore(%arg14 : memref<!tpu.dma_semaphore, #tpu.memory_space<semaphore_mem>>)
    } else {
    }
    %c0 = arith.constant 0 : index
    %c0_1 = arith.constant 0 : index
    %3 = vector.load %arg4[%c0, %c0_1] : memref<128x16xf32, #tpu.memory_space<vmem>>, vector<128x16xf32>
    %c0_2 = arith.constant 0 : index
    %c0_3 = arith.constant 0 : index
    %4 = vector.load %arg6[%c0_2, %c0_3] : memref<16x16xf32, #tpu.memory_space<vmem>>, vector<16x16xf32>
    %cst = arith.constant dense<0.000000e+00> : vector<128x16xf32>
    %5 = tpu.matmul %3, %4, %cst {dimension_numbers = #tpu.dot_dimension_numbers<[1], [0], [0], [1], [0, 0, 1, 1], [], []>} : vector<128x16xf32>, vector<16x16xf32>, vector<128x16xf32> -> vector<128x16xf32>
    %cst_4 = arith.constant 0.000000e+00 : f32
    %6 = vector.broadcast %cst_4 : f32 to vector<128x16xf32>
    %7 = arith.maximumf %5, %6 : vector<128x16xf32>
    %c0_5 = arith.constant 0 : index
    %c0_6 = arith.constant 0 : index
    %8 = vector.load %arg7[%c0_5, %c0_6] : memref<16x8xf32, #tpu.memory_space<vmem>>, vector<16x8xf32>
    %cst_7 = arith.constant dense<0.000000e+00> : vector<128x8xf32>
    %9 = tpu.matmul %7, %8, %cst_7 {dimension_numbers = #tpu.dot_dimension_numbers<[1], [0], [0], [1], [0, 0, 1, 1], [], []>} : vector<128x16xf32>, vector<16x8xf32>, vector<128x8xf32> -> vector<128x8xf32>
    %cst_8 = arith.constant 0.000000e+00 : f32
    %10 = vector.broadcast %cst_8 : f32 to vector<128x8xf32>
    %11 = arith.maximumf %9, %10 : vector<128x8xf32>
    %c0_9 = arith.constant 0 : index
    %c0_10 = arith.constant 0 : index
    %12 = vector.load %arg12[%c0_9, %c0_10] : memref<16x8xf32, #tpu.memory_space<vmem>>, vector<16x8xf32>
    %c0_11 = arith.constant 0 : index
    %c0_12 = arith.constant 0 : index
    %13 = vector.load %arg5[%c0_11, %c0_12] : memref<16x128xf32, #tpu.memory_space<vmem>>, vector<16x128xf32>
    %cst_13 = arith.constant dense<0.000000e+00> : vector<16x8xf32>
    %14 = tpu.matmul %13, %11, %cst_13 {dimension_numbers = #tpu.dot_dimension_numbers<[1], [0], [0], [1], [0, 0, 1, 1], [], []>} : vector<16x128xf32>, vector<128x8xf32>, vector<16x8xf32> -> vector<16x8xf32>
    %15 = arith.addf %12, %14 : vector<16x8xf32>
    %c0_14 = arith.constant 0 : index
    %c0_15 = arith.constant 0 : index
    %16 = vector.load %arg12[%c0_14, %c0_15] : memref<16x8xf32, #tpu.memory_space<vmem>>, vector<16x8xf32>
    tpu.vector_store %arg12[%c0_14, %c0_15], %15 {strides = array<i32>} : memref<16x8xf32, #tpu.memory_space<vmem>>, vector<16x8xf32>,
    %c2_i32 = arith.constant 2 : i32
    %17 = arith.cmpi eq, %arg1, %c2_i32 : i32
    %18 = arith.extui %17 : i1 to i32
    %c0_i32_16 = arith.constant 0 : i32
    %19 = arith.cmpi ne, %18, %c0_i32_16 : i32
    scf.if %19 {
      tpu.wait_dma2 semaphore(%arg14 : memref<!tpu.dma_semaphore, #tpu.memory_space<semaphore_mem>>) src(%arg3 : memref<16x16xf32, #tpu.memory_space<any>>) dst(%arg13 : memref<16x16xf32, #tpu.memory_space<vmem>>)
      %c0_17 = arith.constant 0 : index
      %c0_18 = arith.constant 0 : index
      %20 = vector.load %arg2[%c0_17, %c0_18] : memref<16x8xf32, #tpu.memory_space<vmem>>, vector<16x8xf32>
      %c0_19 = arith.constant 0 : index
      %c0_20 = arith.constant 0 : index
      %21 = vector.load %arg12[%c0_19, %c0_20] : memref<16x8xf32, #tpu.memory_space<vmem>>, vector<16x8xf32>
      %c0_21 = arith.constant 0 : index
      %c0_22 = arith.constant 0 : index
      %22 = vector.load %arg8[%c0_21, %c0_22] : memref<8x1024xf32, #tpu.memory_space<vmem>>, vector<8x1024xf32>
      %cst_23 = arith.constant dense<0.000000e+00> : vector<16x1024xf32>
      %23 = tpu.matmul %21, %22, %cst_23 {dimension_numbers = #tpu.dot_dimension_numbers<[1], [0], [0], [1], [0, 0, 1, 1], [], []>} : vector<16x8xf32>, vector<8x1024xf32>, vector<16x1024xf32> -> vector<16x1024xf32>
      %24 = vector.extract_strided_slice %20 {offsets = [0, 0], sizes = [16, 1], strides = [1, 1]} : vector<16x8xf32> to vector<16x1xf32>
      %25 = vector.extract_strided_slice %23 {offsets = [0, 0], sizes = [16, 128], strides = [1, 1]} : vector<16x1024xf32> to vector<16x128xf32>
      %26 = vector.broadcast %24 : vector<16x1xf32> to vector<16x128xf32>
      %27 = arith.mulf %26, %25 : vector<16x128xf32>
      %28 = vector.extract_strided_slice %20 {offsets = [0, 1], sizes = [16, 1], strides = [1, 1]} : vector<16x8xf32> to vector<16x1xf32>
      %29 = vector.extract_strided_slice %23 {offsets = [0, 128], sizes = [16, 128], strides = [1, 1]} : vector<16x1024xf32> to vector<16x128xf32>
      %30 = vector.broadcast %28 : vector<16x1xf32> to vector<16x128xf32>
      %31 = arith.mulf %30, %29 : vector<16x128xf32>
      %32 = arith.addf %27, %31 : vector<16x128xf32>
      %33 = vector.extract_strided_slice %20 {offsets = [0, 2], sizes = [16, 1], strides = [1, 1]} : vector<16x8xf32> to vector<16x1xf32>
      %34 = vector.extract_strided_slice %23 {offsets = [0, 256], sizes = [16, 128], strides = [1, 1]} : vector<16x1024xf32> to vector<16x128xf32>
      %35 = vector.broadcast %33 : vector<16x1xf32> to vector<16x128xf32>
      %36 = arith.mulf %35, %34 : vector<16x128xf32>
      %37 = arith.addf %32, %36 : vector<16x128xf32>
      %38 = vector.extract_strided_slice %20 {offsets = [0, 3], sizes = [16, 1], strides = [1, 1]} : vector<16x8xf32> to vector<16x1xf32>
      %39 = vector.extract_strided_slice %23 {offsets = [0, 384], sizes = [16, 128], strides = [1, 1]} : vector<16x1024xf32> to vector<16x128xf32>
      %40 = vector.broadcast %38 : vector<16x1xf32> to vector<16x128xf32>
      %41 = arith.mulf %40, %39 : vector<16x128xf32>
      %42 = arith.addf %37, %41 : vector<16x128xf32>
      %43 = vector.extract_strided_slice %20 {offsets = [0, 4], sizes = [16, 1], strides = [1, 1]} : vector<16x8xf32> to vector<16x1xf32>
      %44 = vector.extract_strided_slice %23 {offsets = [0, 512], sizes = [16, 128], strides = [1, 1]} : vector<16x1024xf32> to vector<16x128xf32>
      %45 = vector.broadcast %43 : vector<16x1xf32> to vector<16x128xf32>
      %46 = arith.mulf %45, %44 : vector<16x128xf32>
      %47 = arith.addf %42, %46 : vector<16x128xf32>
      %48 = vector.extract_strided_slice %20 {offsets = [0, 5], sizes = [16, 1], strides = [1, 1]} : vector<16x8xf32> to vector<16x1xf32>
      %49 = vector.extract_strided_slice %23 {offsets = [0, 640], sizes = [16, 128], strides = [1, 1]} : vector<16x1024xf32> to vector<16x128xf32>
      %50 = vector.broadcast %48 : vector<16x1xf32> to vector<16x128xf32>
      %51 = arith.mulf %50, %49 : vector<16x128xf32>
      %52 = arith.addf %47, %51 : vector<16x128xf32>
      %53 = vector.extract_strided_slice %20 {offsets = [0, 6], sizes = [16, 1], strides = [1, 1]} : vector<16x8xf32> to vector<16x1xf32>
      %54 = vector.extract_strided_slice %23 {offsets = [0, 768], sizes = [16, 128], strides = [1, 1]} : vector<16x1024xf32> to vector<16x128xf32>
      %55 = vector.broadcast %53 : vector<16x1xf32> to vector<16x128xf32>
      %56 = arith.mulf %55, %54 : vector<16x128xf32>
      %57 = arith.addf %52, %56 : vector<16x128xf32>
      %58 = vector.extract_strided_slice %20 {offsets = [0, 7], sizes = [16, 1], strides = [1, 1]} : vector<16x8xf32> to vector<16x1xf32>
      %59 = vector.extract_strided_slice %23 {offsets = [0, 896], sizes = [16, 128], strides = [1, 1]} : vector<16x1024xf32> to vector<16x128xf32>
      %60 = vector.broadcast %58 : vector<16x1xf32> to vector<16x128xf32>
      %61 = arith.mulf %60, %59 : vector<16x128xf32>
      %62 = arith.addf %57, %61 : vector<16x128xf32>
      %c0_24 = arith.constant 0 : index
      %c0_25 = arith.constant 0 : index
      %63 = vector.load %arg13[%c0_24, %c0_25] : memref<16x16xf32, #tpu.memory_space<vmem>>, vector<16x16xf32>
      %cst_26 = arith.constant dense<0.000000e+00> : vector<16x128xf32>
      %64 = tpu.matmul %63, %62, %cst_26 {dimension_numbers = #tpu.dot_dimension_numbers<[1], [0], [0], [1], [0, 0, 1, 1], [], []>} : vector<16x16xf32>, vector<16x128xf32>, vector<16x128xf32> -> vector<16x128xf32>
      %c0_27 = arith.constant 0 : index
      %c0_28 = arith.constant 0 : index
      %65 = vector.load %arg9[%c0_27, %c0_28] : memref<8x128xf32, #tpu.memory_space<vmem>>, vector<8x128xf32>
      %cst_29 = arith.constant dense<0.000000e+00> : vector<16x128xf32>
      %66 = tpu.matmul %20, %65, %cst_29 {dimension_numbers = #tpu.dot_dimension_numbers<[1], [0], [0], [1], [0, 0, 1, 1], [], []>} : vector<16x8xf32>, vector<8x128xf32>, vector<16x128xf32> -> vector<16x128xf32>
      %c0_30 = arith.constant 0 : index
      %c0_31 = arith.constant 0 : index
      %67 = vector.load %arg10[%c0_30, %c0_31] : memref<1x128xf32, #tpu.memory_space<vmem>>, vector<1x128xf32>
      %68 = vector.broadcast %67 : vector<1x128xf32> to vector<16x128xf32>
      %69 = arith.addf %66, %68 : vector<16x128xf32>
      %c0_i32_32 = arith.constant 0 : i32
      %70 = arith.cmpi eq, %arg0, %c0_i32_32 : i32
      %cst_33 = arith.constant 1.000000e+00 : f32
      %cst_34 = arith.constant 0.000000e+00 : f32
      %71 = arith.select %70, %cst_33, %cst_34 : f32
      %72 = vector.broadcast %71 : f32 to vector<16x128xf32>
      %73 = arith.mulf %72, %69 : vector<16x128xf32>
      %74 = arith.addf %64, %73 : vector<16x128xf32>
      %c0_35 = arith.constant 0 : index
      %c0_36 = arith.constant 0 : index
      %75 = vector.load %arg11[%c0_35, %c0_36] : memref<16x128xf32, #tpu.memory_space<vmem>>, vector<16x128xf32>
      tpu.vector_store %arg11[%c0_35, %c0_36], %74 {strides = array<i32>} : memref<16x128xf32, #tpu.memory_space<vmem>>, vector<16x128xf32>,
    } else {
    }
    return
  }
  func.func @transform_0(%arg0: i32, %arg1: i32) -> (i32, i32) {
    %c0_i32 = arith.constant 0 : i32
    %c0_i32_0 = arith.constant 0 : i32
    %c0_i32_1 = arith.constant 0 : i32
    return %c0_i32, %c0_i32_0 : i32, i32
  }
  func.func @transform_2(%arg0: i32, %arg1: i32) -> (i32, i32) {
    %c3_i32 = arith.constant 3 : i32
    %0 = arith.muli %arg0, %c3_i32 : i32
    %1 = arith.addi %0, %arg1 : i32
    %c0_i32 = arith.constant 0 : i32
    %c0_i32_0 = arith.constant 0 : i32
    return %1, %c0_i32 : i32, i32
  }
  func.func @transform_3(%arg0: i32, %arg1: i32) -> (i32, i32) {
    %c3_i32 = arith.constant 3 : i32
    %0 = arith.muli %arg0, %c3_i32 : i32
    %1 = arith.addi %0, %arg1 : i32
    %c0_i32 = arith.constant 0 : i32
    %c0_i32_0 = arith.constant 0 : i32
    return %c0_i32, %1 : i32, i32
  }
  func.func @transform_4(%arg0: i32, %arg1: i32) -> (i32, i32) {
    %c0_i32 = arith.constant 0 : i32
    %c0_i32_0 = arith.constant 0 : i32
    %c0_i32_1 = arith.constant 0 : i32
    return %c0_i32, %c0_i32_0 : i32, i32
  }
  func.func @transform_5(%arg0: i32, %arg1: i32) -> (i32, i32) {
    %c0_i32 = arith.constant 0 : i32
    %c0_i32_0 = arith.constant 0 : i32
    %c0_i32_1 = arith.constant 0 : i32
    return %c0_i32, %c0_i32_0 : i32, i32
  }
  func.func @transform_6(%arg0: i32, %arg1: i32) -> (i32, i32) {
    %c0_i32 = arith.constant 0 : i32
    %c0_i32_0 = arith.constant 0 : i32
    %c0_i32_1 = arith.constant 0 : i32
    return %c0_i32, %c0_i32_0 : i32, i32
  }
  func.func @transform_7(%arg0: i32, %arg1: i32) -> (i32, i32) {
    %c0_i32 = arith.constant 0 : i32
    %c0_i32_0 = arith.constant 0 : i32
    %c0_i32_1 = arith.constant 0 : i32
    return %c0_i32, %c0_i32_0 : i32, i32
  }
  func.func @transform_8(%arg0: i32, %arg1: i32) -> (i32, i32) {
    %c0_i32 = arith.constant 0 : i32
    %c0_i32_0 = arith.constant 0 : i32
    %c0_i32_1 = arith.constant 0 : i32
    return %c0_i32, %c0_i32_0 : i32, i32
  }
  func.func @transform_9(%arg0: i32, %arg1: i32) -> (i32, i32) {
    %c0_i32 = arith.constant 0 : i32
    %c0_i32_0 = arith.constant 0 : i32
    return %arg0, %c0_i32 : i32, i32
  }
}

</mosaic_0001>

<bundles_post_ra>
// kernel: tpu_custom_call.1
= control target key start
LH: loop header
LB: loop body
LE: loop exit
PB: predicated region body
PF: predicated region fallthrough
CT: control target
= control target key end

     0   :  { %s1924_s0 = inlined_call_operand.vmem [shape: f32[16,8], index: 0, kind: input, shape index: {}]   ;;  %s1925_s1 = inlined_call_operand.vmem [shape: f32[16,16], index: 1, kind: input, shape index: {}]   ;;  %s1926_s2 = inlined_call_operand.vmem [shape: f32[768,16], index: 2, kind: input, shape index: {}]   ;;  %s1927_s3 = inlined_call_operand.vmem [shape: f32[16,768], index: 3, kind: input, shape index: {}]   ;;  %s1928_s4 = inlined_call_operand.vmem [shape: f32[16,16], index: 4, kind: input, shape index: {}]   ;;  %s1929_s5 = inlined_call_operand.vmem [shape: f32[16,8], index: 5, kind: input, shape index: {}]   ;;  %s1930_s6 = inlined_call_operand.vmem [shape: f32[8,1024], index: 6, kind: input, shape index: {}]   ;;  %s1931_s7 = inlined_call_operand.vmem [shape: f32[8,128], index: 7, kind: input, shape index: {}]   ;;  %s1932_s8 = inlined_call_operand.vmem [shape: f32[1,128], index: 8, kind: input, shape index: {}]   ;;  %s1933_s9 = inlined_call_operand.hbm [shape: f32[32,128], index: 9, kind: output, shape index: {}]  }
   0x1   :  { %1939 = sst [smem:[#allocation15_spill]] %s1927_s3 }
   0x2   :  { %1940 = sst [smem:[#allocation16_spill]] %s1931_s7 }
   0x3   :  { %1941 = sst [smem:[#allocation17_spill]] %s1932_s8 }
   0x4   :  { %1942 = sst [smem:[#allocation18_spill]] %s1933_s9 }
   0x5   :  { %14 = vsyncpa [#allocation7], 0 }
   0x6   :  { %16 = vsyncpa [#allocation7 + $0x1], 0  ;;  %s1601_s30 = smov 0   ;;  %s1603_s10 = smov 0  }
   0x7   :  { %s1605_s11 = smov 0   ;;  %s1607_s12 = smov 0  }
   0x8   :  { %s1609_s13 = smov 0   ;;  %s1611_s14 = smov 0  }
   0x9   :  { %s1613_s15 = smov 0   ;;  %s1615_s16 = smov 0  }
   0xa   :  { %s1617_s17 = smov 0   ;;  %s1619_s18 = smov 0  }
   0xb LB: > { %1943 = sst [smem:[#allocation11_spill]] %s1530_s16  ;;  %s1233_s19 = sadd.s32 4294967295, %s1538_s18   ;;  %s1538_s18 = sphi %s1619_s18, %s22_s18   ;;  %s1534_s17 = sphi %s1617_s17, %s1957_s17   ;;  %s1530_s16 = sphi %s1615_s16, %s1956_s16   ;;  %s1526_s15 = sphi %s1613_s15, %s1955_s15   ;;  %s1522_s14 = sphi %s1611_s14, %s1954_s14   ;;  %s1518_s13 = sphi %s1609_s13, %s1962_s13   ;;  %s1514_s12 = sphi %s1607_s12, %s1961_s12   ;;  %s1510_s11 = sphi %s1605_s11, %s1960_s11   ;;  %s1506_s10 = sphi %s1603_s10, %s1959_s10   ;;  %s1502_s30 = sphi %s1601_s30, %s1958_s30  }
   0xc   : > { %1944 = sst [smem:[#allocation12_spill]] %s1534_s17  ;;  %s31_s20 = sadd.s32 1, %s1530_s16 }
   0xd   : > { %s34_s21 = sadd.s32 1, %s1534_s17  ;;  %p32_p0 = scmp.ge.s32.totalorder %s31_s20, 3 }
   0xe   : > { %s89_s22 = smul.u32 3, %s1534_s17  ;;  %s1234_s23 = sadd.s32 4294967294, %s1538_s18  }
   0xf   : > { %p103_p1 = scmp.ne.s32.totalorder %s1518_s13, %s1514_s12  ;;  %s1964_s20 = smov (%p32_p0, %s31_s20), 0 }
  0x10   : > { %1945 = sst [smem:[#allocation13_spill]] %s1964_s20  ;;  %s1966_s21 = smov (!%p32_p0, %s34_s21), %s1534_s17 }
  0x11   : > { %s90_s24 = sadd.s32 %s1530_s16, %s89_s22  ;;  %p104_p2 = scmp.eq.s32.totalorder %s1538_s18, 0 }
  0x12   : > { %p36_p3 = scmp.ge.s32.totalorder %s1966_s21, 2  ;;  %s227_s25 = sadd.s32 1, %s1510_s11 }
  0x13   : > { %p1664_p4 = por %p104_p2, %p103_p1  ;;  %p237_p5 = scmp.ne.s32.totalorder %s1510_s11, %s1506_s10 }
  0x14   : > { %s1968_s21 = smov (%p36_p3, %s1966_s21), 0  ;;  %p238_p6 = scmp.eq.s32.totalorder %s1233_s19, 5 }
  0x15   : > { %1947 = sst [smem:[#allocation14_spill]] %s1968_s21  ;;  %p243_p7 = scmp.ne.s32.totalorder %s1506_s10, %s1502_s30 }
  0x16   : > { %s91_s27 = smul.u32 3, %s1968_s21  ;;  %s224_s28 = ssub.s32 %s1534_s17, %s1968_s21 }
  0x17   : > { %p225_p8 = scmp.eq.s32.totalorder %s224_s28, 0  ;;  %p1677_p9 = por %p238_p6, %p237_p5 }
  0x18   : > { %s92_s22 = sadd.s32 %s91_s27, %s1964_s20  ;;  %p244_p10 = scmp.eq.s32.totalorder %s1234_s23, 5 }
  0x19   : > { %s93_s16 = ssub.s32 %s90_s24, %s92_s22  ;;  %s96_s9 = sadd.s32 1, %s1518_s13 }
  0x1a   : > { %p94_p11 = scmp.eq.s32.totalorder %s93_s16, 0  ;;  %p1683_p12 = por %p244_p10, %p243_p7 }
  0x1b   : > { %s1688_s7 = scalar_select %p225_p8, %s1510_s11, %s227_s25  }
  0x1c   : > { %s1691_s19 = scalar_select %p94_p11, %s1518_s13, %s96_s9  }
  0x1d   : > { %p1236_p13 = scmp.ge.s32.totalorder %s1538_s18, 6 }
  0x1f   : > { %278 = sbr.rel (%p1236_p13) target bundleno = 48 (0x30), region = 40 }
  0x24   : > { %294 = sbr.rel (!%p1664_p4) target bundleno = 48 (0x30), region = 48  ;;  %s296_s27 = sand.u32 (%p1664_p4), 1, %s1518_s13  }
  0x25   : > { %s1238_s23 = sshll.u32 (%p1664_p4), %s90_s24, 3  ;;  %s1237_s28 = sshll.u32 (%p1664_p4), %s296_s27, 4 }
  0x26   : > { %s1950_s3 = sld [smem:[#allocation15_spill]] (%p1664_p4)  ;;  %s298_s25 = scalar_lea.vmem (%p1664_p4), [#allocation5], %s1237_s28 }
  0x2c   : > { %s302_s21 = scalar_lea.vmem %s1950_s3, %s1238_s23 }
  0x2d   : > { %v333_v0 = vld [vmem:[%s302_s21] sm:$0xff]  ;;  %v335_v1 = vld [vmem:[%s302_s21 + $0x30] sm:$0xff] }
  0x2e   : > { %334 = vst [vmem:[%s298_s25] sm:$0xff] %v333_v0 }
  0x2f   : > { %336 = vst [vmem:[%s298_s25 + $0x8] sm:$0xff] %v335_v1 }
  0x30 PF: > { %p1239_p0 = scmp.ge.s32.totalorder %s1538_s18, 1  ;;  %p341_p1 = scmp.lt.s32.totalorder %s1538_s18, 7 }
  0x32   : > { %p342_p2 = pnand %p1239_p0, %p341_p1 }
  0x33   : > { %s348_s9 = sand.u32 (!%p342_p2), 1, %s1514_s12   ;;  %s385_s24 = sand.u32 (!%p342_p2), 1, %s1506_s10  }
  0x34   : > { %345 = sbr.rel (%p342_p2) target bundleno = 900 (0x384), region = 86  ;;  %s1704_s26 = sshll.u32 (!%p342_p2), %s348_s9, 4 }
  0x35   : > { %s1241_s21 = sshll.u32 (!%p342_p2), %s385_s24, 4  ;;  %s388_s27 = smul.u32 (!%p342_p2), 3, %s1526_s15 }
  0x36   : > { %s350_s20 = scalar_lea.vmem (!%p342_p2), [#allocation5], %s1704_s26  ;;  %s1716_s17 = scalar_lea.vmem (!%p342_p2), [#allocation6], %s1241_s21 }
  0x37   : > { %s389_s23 = sadd.s32 (!%p342_p2), %s1522_s14, %s388_s27  ;;  %p1244_p4 = scmp.ne.s32.totalorder (!%p342_p2), %s1522_s14, 0 }
  0x38   : > { %s1242_s28 = sshll.u32 (!%p342_p2), %s389_s23, 4 }
  0x39   : > { %p391_p3 = scmp.lt.s32.totalorder %s1242_s28, 95  ;;  %404 = sbr.rel (%p1244_p4) target bundleno = 68 (0x44), region = 94 }
  0x3b   : > { %s1970_s28 = smov (!%p391_p3, %s1242_s28), 95 }
  0x3c   : > { %s1243_s22 = sshll.u32 %s1970_s28, 3 }
  0x3d   : > { %s1713_s3 = scalar_lea.vmem %s1926_s2, %s1243_s22 }
  0x3e   : > { %vm405_vm0 = vcmask 64512   ;;  %v418_v2 = vld [vmem:[%s1925_s1] sm:$0xff]  ;;  %v1540_v3 = vmov 0.0   ;;  %v420_v4 = vld [vmem:[%s1925_s1 + $0x8] sm:$0xff] }
  0x3f   : > { %406 = vst.msk [vmem:[#allocation2] sm:$0xff] %vm405_vm0, %v1540_v3 }
  0x40   : > { %407 = vst.msk [vmem:[#allocation2 + $0x8] sm:$0xff] %vm405_vm0, %v1540_v3 }
  0x41   : > { %419 = vst [vmem:[#allocation3] sm:$0xff] %v418_v2 }
  0x42   : > { %421 = vst [vmem:[#allocation3 + $0x8] sm:$0xff] %v420_v4 }
  0x43   : > { %427 = vsyncadd [#allocation4], 256 }
  0x44 PF: > { %v445_v5 = vld [vmem:[%s1928_s4 + $0x8] sm:$0xff]  ;;  %v444_v6 = vld [vmem:[%s1928_s4] sm:$0xff]  ;;  %vm446_vm1 = vcmask 130048   ;;  %v438_v9 = vld [vmem:[%s1713_s3 + $0x50] sm:$0xff]  ;;  %vm736_vm2 = vcmask 64512   ;;  %p1277_p5 = scmp.ne.s32.totalorder %s1522_s14, 2 }
  0x45   : > { %1305 = vmatpush.msra.mxu3 %v445_v5  ;;  %v437_v7 = vld [vmem:[%s1713_s3 + $0x48] sm:$0xff]  ;;  %509 = vmatpush.msra.mxu0 %v445_v5  ;;  %v428_v8 = vld [vmem:[%s1713_s3] sm:$0xff]  ;;  %v439_v11 = vld [vmem:[%s1713_s3 + $0x58] sm:$0xff] }
  0x46   : > { %v429_v10 = vld [vmem:[%s1713_s3 + $0x8] sm:$0xff]  ;;  %v430_v12 = vld [vmem:[%s1713_s3 + $0x10] sm:$0xff]  ;;  %v440_v13 = vld [vmem:[%s1713_s3 + $0x60] sm:$0xff] }
  0x47   : > { %1306 = vmatpush.msra.mxu3 %v444_v6  ;;  %510 = vmatpush.msra.mxu0 %v444_v6  ;;  %v431_v14 = vld [vmem:[%s1713_s3 + $0x18] sm:$0xff]  ;;  %v441_v15 = vld [vmem:[%s1713_s3 + $0x68] sm:$0xff]  ;;  %v432_v16 = vld [vmem:[%s1713_s3 + $0x20] sm:$0xff] }
  0x48   : > { %1254 = vmatmul.msk.f32.vlgmr.msra.gmra.mxu3 %vm446_vm1, %v437_v7  ;;  %1245 = vmatmul.msk.f32.vlgmr.msra.gmra.mxu0 %vm446_vm1, %v428_v8  ;;  %v442_v17 = vld [vmem:[%s1713_s3 + $0x70] sm:$0xff]  ;;  %v433_v18 = vld [vmem:[%s1713_s3 + $0x28] sm:$0xff]  ;;  %v443_v19 = vld [vmem:[%s1713_s3 + $0x78] sm:$0xff] }
  0x49   : > { %v434_v20 = vld [vmem:[%s1713_s3 + $0x30] sm:$0xff]  ;;  %v435_v21 = vld [vmem:[%s1713_s3 + $0x38] sm:$0xff]  ;;  %v436_v22 = vld [vmem:[%s1713_s3 + $0x40] sm:$0xff] }
  0x4a   : > { %v577_v23 = vld [vmem:[%s1929_s5 + $0x8] sm:$0xff]  ;;  %v576_v24 = vld [vmem:[%s1929_s5] sm:$0xff] }
  0x4b   : > { %1307 = vmatpush.msra.mxu2 %v577_v23  ;;  %640 = vmatpush.msra.mxu1 %v577_v23 }
  0x4d   : > { %1308 = vmatpush.msra.mxu2 %v576_v24  ;;  %641 = vmatpush.msra.mxu1 %v576_v24 }
  0x50   : > { %1255 = vmatmul.msk.f32.gmra.mxu3 %vm446_vm1, %v438_v9  ;;  %1246 = vmatmul.msk.f32.gmra.mxu0 %vm446_vm1, %v429_v10 }
  0x58   : > { %1256 = vmatmul.msk.f32.gmra.mxu3 %vm446_vm1, %v439_v11  ;;  %1247 = vmatmul.msk.f32.gmra.mxu0 %vm446_vm1, %v430_v12 }
  0x60   : > { %1257 = vmatmul.msk.f32.gmra.mxu3 %vm446_vm1, %v440_v13  ;;  %1248 = vmatmul.msk.f32.gmra.mxu0 %vm446_vm1, %v431_v14 }
  0x68   : > { %1258 = vmatmul.msk.f32.gmra.mxu3 %vm446_vm1, %v441_v15  ;;  %1249 = vmatmul.msk.f32.gmra.mxu0 %vm446_vm1, %v432_v16 }
  0x70   : > { %1259 = vmatmul.msk.f32.gmra.mxu3 %vm446_vm1, %v442_v17  ;;  %1250 = vmatmul.msk.f32.gmra.mxu0 %vm446_vm1, %v433_v18 }
  0x78   : > { %1260 = vmatmul.msk.f32.gmra.mxu3 %vm446_vm1, %v443_v19  ;;  %1251 = vmatmul.msk.f32.gmra.mxu0 %vm446_vm1, %v434_v20 }
  0x80   : > { %1252 = vmatmul.msk.f32.gmra.mxu0 %vm446_vm1, %v435_v21 }
  0x88   : > { %1253 = vmatmul.msk.f32.gmra.mxu0 %vm446_vm1, %v436_v22 }
  0xc5   : > { %v512_v25 = vpop.f32.mrf.mxu0 }
  0xc6   : > { %v560_v26 = vmax.f32 %v512_v25, 0.0  ;;  %v709_v25 = vld [vmem:[%s350_s20] sm:$0xff] }
  0xc8   : > { %1261 = vmatmul.msk.f32.vlgmr.msra.gmra.mxu1 %vm446_vm1, %v560_v26  ;;  %v710_v26 = vld [vmem:[%s350_s20 + $0x8] sm:$0xff] }
  0xcb   : > { %v539_v27 = vpop.f32.mrf.mxu3 }
  0xcc   : > { %v569_v28 = vmax.f32 %v539_v27, 0.0  ;;  %v707_v27 = vld [vmem:[#allocation2] sm:$0xff] }
  0xcd   : > { %v515_v29 = vpop.f32.mrf.mxu0 }
  0xce   : > { %1270 = vmatmul.msk.f32.vlgmr.msra.gmra.mxu2 %vm446_vm1, %v569_v28  ;;  %v561_v30 = vmax.f32 %v515_v29, 0.0 }
  0xd0   : > { %1262 = vmatmul.msk.f32.gmra.mxu1 %vm446_vm1, %v561_v30  ;;  %v708_v30 = vld [vmem:[#allocation2 + $0x8] sm:$0xff] }
  0xd3   : > { %v542_v31 = vpop.f32.mrf.mxu3 }
  0xd4   : > { %v570_v32 = vmax.f32 %v542_v31, 0.0 }
  0xd5   : > { %v518_v33 = vpop.f32.mrf.mxu0 }
  0xd6   : > { %1271 = vmatmul.msk.f32.gmra.mxu2 %vm446_vm1, %v570_v32  ;;  %v562_v34 = vmax.f32 %v518_v33, 0.0 }
  0xd8   : > { %1263 = vmatmul.msk.f32.gmra.mxu1 %vm446_vm1, %v562_v34 }
  0xdb   : > { %v545_v35 = vpop.f32.mrf.mxu3 }
  0xdc   : > { %v571_v36 = vmax.f32 %v545_v35, 0.0 }
  0xdd   : > { %v521_v37 = vpop.f32.mrf.mxu0 }
  0xde   : > { %1272 = vmatmul.msk.f32.gmra.mxu2 %vm446_vm1, %v571_v36  ;;  %v563_v38 = vmax.f32 %v521_v37, 0.0 }
  0xe0   : > { %1264 = vmatmul.msk.f32.gmra.mxu1 %vm446_vm1, %v563_v38 }
  0xe3   : > { %v548_v39 = vpop.f32.mrf.mxu3 }
  0xe4   : > { %v572_v40 = vmax.f32 %v548_v39, 0.0 }
  0xe5   : > { %v524_v41 = vpop.f32.mrf.mxu0 }
  0xe6   : > { %1273 = vmatmul.msk.f32.gmra.mxu2 %vm446_vm1, %v572_v40  ;;  %v564_v42 = vmax.f32 %v524_v41, 0.0 }
  0xe8   : > { %1265 = vmatmul.msk.f32.gmra.mxu1 %vm446_vm1, %v564_v42 }
  0xeb   : > { %v551_v43 = vpop.f32.mrf.mxu3 }
  0xec   : > { %v573_v44 = vmax.f32 %v551_v43, 0.0 }
  0xed   : > { %v527_v45 = vpop.f32.mrf.mxu0 }
  0xee   : > { %1274 = vmatmul.msk.f32.gmra.mxu2 %vm446_vm1, %v573_v44  ;;  %v565_v46 = vmax.f32 %v527_v45, 0.0 }
  0xf0   : > { %1266 = vmatmul.msk.f32.gmra.mxu1 %vm446_vm1, %v565_v46 }
  0xf3   : > { %v554_v47 = vpop.f32.mrf.mxu3 }
  0xf4   : > { %v574_v48 = vmax.f32 %v554_v47, 0.0 }
  0xf5   : > { %v530_v49 = vpop.f32.mrf.mxu0 }
  0xf6   : > { %1275 = vmatmul.msk.f32.gmra.mxu2 %vm446_vm1, %v574_v48  ;;  %v566_v50 = vmax.f32 %v530_v49, 0.0 }
  0xf8   : > { %1267 = vmatmul.msk.f32.gmra.mxu1 %vm446_vm1, %v566_v50 }
  0xfb   : > { %v557_v51 = vpop.f32.mrf.mxu3 }
  0xfc   : > { %v575_v52 = vmax.f32 %v557_v51, 0.0 }
  0xfd   : > { %v533_v53 = vpop.f32.mrf.mxu0 }
  0xfe   : > { %1276 = vmatmul.msk.f32.gmra.mxu2 %vm446_vm1, %v575_v52  ;;  %v567_v54 = vmax.f32 %v533_v53, 0.0 }
 0x100   : > { %1268 = vmatmul.msk.f32.gmra.mxu1 %vm446_vm1, %v567_v54 }
 0x105   : > { %v536_v55 = vpop.f32.mrf.mxu0 }
 0x106   : > { %v568_v56 = vmax.f32 %v536_v55, 0.0 }
 0x108   : > { %1269 = vmatmul.msk.f32.gmra.mxu1 %vm446_vm1, %v568_v56 }
 0x145   : > { %v643_v57 = vpop.f32.mrf.mxu1 }
 0x146   : > { %v691_v24 = vmax.f32 %v643_v57, 0.0 }
 0x14d   : > { %v646_v58 = vpop.f32.mrf.mxu1 }
 0x14e   : > { %v692_v23 = vmax.f32 %v646_v58, 0.0 }
 0x151   : > { %v670_v59 = vpop.f32.mrf.mxu2 }
 0x152   : > { %v700_v15 = vmax.f32 %v670_v59, 0.0 }
 0x155   : > { %v649_v60 = vpop.f32.mrf.mxu1 }
 0x156   : > { %v693_v22 = vmax.f32 %v649_v60, 0.0 }
 0x159   : > { %v673_v61 = vpop.f32.mrf.mxu2 }
 0x15a   : > { %v701_v14 = vmax.f32 %v673_v61, 0.0 }
 0x15d   : > { %v652_v62 = vpop.f32.mrf.mxu1 }
 0x15e   : > { %v694_v21 = vmax.f32 %v652_v62, 0.0 }
 0x161   : > { %v676_v63 = vpop.f32.mrf.mxu2 }
 0x162   : > { %v702_v12 = vmax.f32 %v676_v63, 0.0 }
 0x165   : > { %v655_v0 = vpop.f32.mrf.mxu1 }
 0x166   : > { %v695_v20 = vmax.f32 %v655_v0, 0.0 }
 0x169   : > { %v679_v1 = vpop.f32.mrf.mxu2 }
 0x16a   : > { %v703_v11 = vmax.f32 %v679_v1, 0.0 }
 0x16d   : > { %v658_v2 = vpop.f32.mrf.mxu1 }
 0x16e   : > { %v696_v19 = vmax.f32 %v658_v2, 0.0 }
 0x171   : > { %v682_v3 = vpop.f32.mrf.mxu2 }
 0x172   : > { %v704_v10 = vmax.f32 %v682_v3, 0.0 }
 0x175   : > { %v661_v4 = vpop.f32.mrf.mxu1 }
 0x176   : > { %v697_v18 = vmax.f32 %v661_v4, 0.0 }
 0x179   : > { %v685_v5 = vpop.f32.mrf.mxu2 }
 0x17a   : > { %v705_v9 = vmax.f32 %v685_v5, 0.0 }
 0x17d   : > { %v664_v7 = vpop.f32.mrf.mxu1 }
 0x17e   : > { %v698_v17 = vmax.f32 %v664_v7, 0.0 }
 0x181   : > { %v688_v6 = vpop.f32.mrf.mxu2 }
 0x182   : > { %v706_v8 = vmax.f32 %v688_v6, 0.0 }
 0x184   : > { %711 = vmatpush.msrb.mxu2 %v706_v8 }
 0x185   : > { %v667_v13 = vpop.f32.mrf.mxu1 }
 0x186   : > { %712 = vmatpush.msrb.mxu2 %v705_v9  ;;  %v699_v16 = vmax.f32 %v667_v13, 0.0 }
 0x188   : > { %713 = vmatpush.msrb.mxu2 %v704_v10 }
 0x18a   : > { %714 = vmatpush.msrb.mxu2 %v703_v11 }
 0x18c   : > { %715 = vmatpush.msrb.mxu2 %v702_v12 }
 0x18e   : > { %716 = vmatpush.msrb.mxu2 %v701_v14 }
 0x190   : > { %717 = vmatpush.msrb.mxu2 %v700_v15 }
 0x192   : > { %718 = vmatpush.msrb.mxu2 %v699_v16 }
 0x194   : > { %719 = vmatpush.msrb.mxu2 %v698_v17 }
 0x196   : > { %720 = vmatpush.msrb.mxu2 %v697_v18 }
 0x198   : > { %721 = vmatpush.msrb.mxu2 %v696_v19 }
 0x19a   : > { %722 = vmatpush.msrb.mxu2 %v695_v20 }
 0x19c   : > { %723 = vmatpush.msrb.mxu2 %v694_v21 }
 0x19e   : > { %724 = vmatpush.msrb.mxu2 %v693_v22 }
 0x1a0   : > { %725 = vmatpush.msrb.mxu2 %v692_v23 }
 0x1a2   : > { %726 = vmatpush.msrb.mxu2 %v691_v24 }
 0x1a3   : > { %727 = vmatmul.f32.vlgmr.msrb.gmra.mxu2 %v709_v25 }
 0x1ab   : > { %730 = vmatmul.f32.gmra.mxu2 %v710_v26 }
 0x226   : > { %v728_v28 = vpop.f32.mrf.mxu2 }
 0x227   : > { %v734_v29 = vadd.f32 %v728_v28, %v707_v27 }
 0x229   : > { %737 = vst.msk [vmem:[#allocation2] sm:$0xff] %vm736_vm2, %v734_v29 }
 0x22d   : > { %742 = sbr.rel (%p1277_p5) target bundleno = 879 (0x36f), region = 117 }
 0x22e   : > { %v731_v31 = vpop.f32.mrf.mxu2 }
 0x22f   : > { %v735_v32 = vadd.f32 %v731_v31, %v708_v30 }
 0x231   : > { %738 = vst.msk [vmem:[#allocation2 + $0x8] sm:$0xff] %vm736_vm2, %v735_v32 }
 0x232   : > { %1494 = dma.done.wait [#allocation4], 256 }
 0x233   : > { %1495 = vsyncadd [#allocation4], 4294967040  ;;  %v1541_v33 = vmov 0   ;;  %v1542_v34 = vmov 2   ;;  %v750_v35 = vld [vmem:[%s1930_s6] sm:$0xff]  ;;  %v751_v36 = vld [vmem:[%s1930_s6 + $0x8] sm:$0xff] }
 0x234   : > { %1411 = vset.pattern.permute.xlu1 %v1541_v33  ;;  %1409 = vset.pattern.permute.xlu0 %v1541_v33  ;;  %v1801_v37 = vld [vmem:[%s1924_s0] sm:$0xff]  ;;  %v752_v40 = vld [vmem:[%s1930_s6 + $0x10] sm:$0xff]  ;;  %v753_v41 = vld [vmem:[%s1930_s6 + $0x18] sm:$0xff]  ;;  %v1543_v47 = vmov 1   ;;  %v1544_v48 = vmov 3   ;;  %v1545_v49 = vmov 4  }
 0x235   : > { %1413 = vset.pattern.permute.xlu2 %v1542_v34  ;;  %779 = vmatpush.msra.mxu0 %v750_v35  ;;  %v748_v38 = vld [vmem:[#allocation2] sm:$0xff]  ;;  %v1814_v42 = vld [vmem:[%s1924_s0 + $0x8] sm:$0xff]  ;;  %v756_v45 = vld [vmem:[%s1930_s6 + $0x30] sm:$0xff]  ;;  %v1546_v50 = vmov 6   ;;  %v1547_v51 = vmov 5   ;;  %v1548_v52 = vmov 7  }
 0x236   : > { %1309 = vmatpush.msra.mxu2 %v750_v35  ;;  %802 = vmatpush.msra.mxu1 %v751_v36  ;;  %v754_v43 = vld [vmem:[%s1930_s6 + $0x20] sm:$0xff]  ;;  %v755_v44 = vld [vmem:[%s1930_s6 + $0x28] sm:$0xff]  ;;  %v757_v46 = vld [vmem:[%s1930_s6 + $0x38] sm:$0xff]  ;;  %s1951_s25 = sld [smem:[#allocation16_spill]]  ;;  %p1078_p6 = scmp.eq.s32.totalorder %s1526_s15, 0 }
 0x237   : > { %1310 = vmatpush.msra.mxu3 %v751_v36  ;;  %950 = vperm.xlu1 %1411, %v1801_v37   ;;  %s1952_s27 = sld [smem:[#allocation17_spill]] }
 0x238   : > { %v749_v39 = vld [vmem:[#allocation2 + $0x8] sm:$0xff]  ;;  %1278 = vmatmul.msk.f32.vlgmr.msra.gmra.mxu0 %vm736_vm2, %v748_v38  ;;  %1280 = vmatmul.msk.f32.vlgmr.msra.gmra.mxu1 %vm736_vm2, %v748_v38  ;;  %s1079_s3 = scalar_select %p1078_p6, 1.0, 0.0 }
 0x239   : > { %1279 = vmatmul.msk.f32.vlgmr.msra.gmra.mxu2 %vm736_vm2, %v749_v39  ;;  %1281 = vmatmul.msk.f32.vlgmr.msra.gmra.mxu3 %vm736_vm2, %v749_v39 }
 0x23a   : > { %825 = vmatpush.msrb.mxu2 %v752_v40  ;;  %848 = vmatpush.msrb.mxu3 %v753_v41 }
 0x23b   : > { %955 = vperm.xlu0 %1409, %v1814_v42   ;;  %871 = vmatpush.msrb.mxu0 %v754_v43 }
 0x23c   : > { %894 = vmatpush.msrb.mxu1 %v755_v44  ;;  %917 = vmatpush.msra.mxu2 %v756_v45  ;;  %v1046_v63 = vld [vmem:[%s1951_s25] sm:$0xff] }
 0x23d   : > { %940 = vmatpush.msra.mxu3 %v757_v46  ;;  %977 = vperm.xlu2 %1413, %v1814_v42  }
 0x23e   : > { %1070 = vmatpush.msra.mxu0 %v1046_v63 }
 0x23f   : > { %1412 = vset.pattern.permute.xlu1 %v1543_v47 }
 0x240   : > { %1286 = vmatmul.msk.f32.vlgmr.msrb.gmra.mxu0 %vm736_vm2, %v748_v38  ;;  %961 = vperm.xlu1 %1412, %v1801_v37  }
 0x241   : > { %1282 = vmatmul.msk.f32.vlgmr.msrb.gmra.mxu2 %vm736_vm2, %v748_v38  ;;  %1284 = vmatmul.msk.f32.vlgmr.msrb.gmra.mxu3 %vm736_vm2, %v748_v38 }
 0x242   : > { %1288 = vmatmul.msk.f32.vlgmr.msrb.gmra.mxu1 %vm736_vm2, %v748_v38 }
 0x243   : > { %1410 = vset.pattern.permute.xlu0 %v1543_v47 }
 0x244   : > { %965 = vperm.xlu0 %1410, %v1814_v42  }
 0x245   : > { %973 = vperm.xlu2 %1413, %v1801_v37  }
 0x248   : > { %1287 = vmatmul.msk.f32.gmra.mxu0 %vm736_vm2, %v749_v39  ;;  %1414 = vset.pattern.permute.xlu1 %v1544_v48 }
 0x249   : > { %1283 = vmatmul.msk.f32.gmra.mxu2 %vm736_vm2, %v749_v39  ;;  %1285 = vmatmul.msk.f32.gmra.mxu3 %vm736_vm2, %v749_v39 }
 0x24a   : > { %989 = vperm.xlu1 %1414, %v1814_v42   ;;  %1289 = vmatmul.msk.f32.gmra.mxu1 %vm736_vm2, %v749_v39 }
 0x24c   : > { %1416 = vset.pattern.permute.xlu0 %v1545_v49 }
 0x24d   : > { %1001 = vperm.xlu0 %1416, %v1814_v42   ;;  %1415 = vset.pattern.permute.xlu2 %v1544_v48 }
 0x24e   : > { %985 = vperm.xlu2 %1415, %v1801_v37  }
 0x250   : > { %1294 = vmatmul.msk.f32.vlgmr.msra.gmra.mxu0 %vm736_vm2, %v1801_v37 }
 0x251   : > { %1290 = vmatmul.msk.f32.vlgmr.msra.gmra.mxu2 %vm736_vm2, %v748_v38  ;;  %1292 = vmatmul.msk.f32.vlgmr.msra.gmra.mxu3 %vm736_vm2, %v748_v38 }
 0x252   : > { %1417 = vset.pattern.permute.xlu1 %v1545_v49 }
 0x253   : > { %997 = vperm.xlu1 %1417, %v1801_v37  }
 0x255   : > { %1421 = vset.pattern.permute.xlu0 %v1546_v50 }
 0x256   : > { %1021 = vperm.xlu0 %1421, %v1801_v37   ;;  %1418 = vset.pattern.permute.xlu2 %v1547_v51 }
 0x257   : > { %1013 = vperm.xlu2 %1418, %v1814_v42  }
 0x258   : > { %1295 = vmatmul.msk.f32.gmra.mxu0 %vm736_vm2, %v1814_v42 }
 0x259   : > { %1291 = vmatmul.msk.f32.gmra.mxu2 %vm736_vm2, %v749_v39  ;;  %1293 = vmatmul.msk.f32.gmra.mxu3 %vm736_vm2, %v749_v39 }
 0x25b   : > { %1419 = vset.pattern.permute.xlu1 %v1547_v51 }
 0x25c   : > { %1009 = vperm.xlu1 %1419, %v1801_v37  }
 0x25e   : > { %1424 = vset.pattern.permute.xlu0 %v1548_v52 }
 0x25f   : > { %1420 = vset.pattern.permute.xlu2 %v1546_v50 }
 0x260   : > { %1025 = vperm.xlu2 %1420, %v1814_v42  }
 0x264   : > { %1422 = vset.pattern.permute.xlu1 %v1548_v52 }
 0x265   : > { %1037 = vperm.xlu1 %1422, %v1814_v42  }
 0x268   : > { %1423 = vset.pattern.permute.xlu2 %v1548_v52  ;;  %v1044_v52 = vld [vmem:[#allocation3] sm:$0xff] }
 0x269   : > { %1033 = vperm.xlu2 %1423, %v1801_v37  }
 0x297   : > { %v978_v54 = vpop.permute.xlu2 %977 }
 0x29f   : > { %v974_v56 = vpop.permute.xlu2 %973 }
 0x2a8   : > { %v986_v60 = vpop.permute.xlu2 %985 }
 0x2a9   : > { %v951_v53 = vpop.permute.xlu1 %950 }
 0x2ad   : > { %v956_v57 = vpop.permute.xlu0 %955 }
 0x2b1   : > { %v1014_v4 = vpop.permute.xlu2 %1013 }
 0x2b2   : > { %v962_v55 = vpop.permute.xlu1 %961 }
 0x2b5   : > { %v781_v62 = vpop.f32.mrf.mxu0  ;;  %v804_v2 = vpop.f32.mrf.mxu1 }
 0x2b6   : > { %v966_v3 = vpop.permute.xlu0 %965  ;;  %v958_v10 = vmul.f32 %v951_v53, %v781_v62  ;;  %v968_v11 = vmul.f32 %v962_v55, %v804_v2  ;;  %v1045_v53 = vld [vmem:[#allocation3 + $0x8] sm:$0xff]  ;;  %v1425_v55 = vld [vmem:[%s1952_s27] ss:$0 sm:$0xff] }
 0x2b8   : > { %v970_v18 = vadd.f32 %v968_v11, %v958_v10 }
 0x2ba   : > { %v1026_v20 = vpop.permute.xlu2 %1025 }
 0x2bc   : > { %v784_v58 = vpop.f32.mrf.mxu2  ;;  %v807_v59 = vpop.f32.mrf.mxu3 }
 0x2bd   : > { %v990_v61 = vpop.permute.xlu1 %989  ;;  %v873_v5 = vpop.f32.mrf.mxu0  ;;  %v959_v7 = vmul.f32 %v956_v57, %v784_v58  ;;  %v969_v8 = vmul.f32 %v966_v3, %v807_v59  ;;  %v1080_v57 = vstv %s1079_s3 }
 0x2bf   : > { %v896_v14 = vpop.f32.mrf.mxu1  ;;  %v1002_v15 = vpop.permute.xlu0 %1001  ;;  %v971_v16 = vadd.f32 %v969_v8, %v959_v7 }
 0x2c3   : > { %v1034_v40 = vpop.permute.xlu2 %1033 }
 0x2c4   : > { %v827_v0 = vpop.f32.mrf.mxu2  ;;  %v850_v1 = vpop.f32.mrf.mxu3 }
 0x2c5   : > { %v998_v6 = vpop.permute.xlu1 %997  ;;  %v980_v17 = vmul.f32 %v974_v56, %v827_v0  ;;  %v876_v21 = vpop.f32.mrf.mxu0  ;;  %v992_v23 = vmul.f32 %v986_v60, %v850_v1 }
 0x2c6   : > { %v1005_v28 = vmul.f32 %v1002_v15, %v876_v21  ;;  %v1004_v31 = vmul.f32 %v998_v6, %v873_v5 }
 0x2c7   : > { %v982_v22 = vadd.f32 %v980_v17, %v970_v18  ;;  %v899_v32 = vpop.f32.mrf.mxu1 }
 0x2c8   : > { %v1022_v33 = vpop.permute.xlu0 %1021  ;;  %v1017_v37 = vmul.f32 %v1014_v4, %v899_v32 }
 0x2c9   : > { %v994_v30 = vadd.f32 %v992_v23, %v982_v22 }
 0x2cb   : > { %v1006_v36 = vadd.f32 %v1004_v31, %v994_v30 }
 0x2cc   : > { %v830_v9 = vpop.f32.mrf.mxu2  ;;  %v853_v13 = vpop.f32.mrf.mxu3 }
 0x2cd   : > { %v981_v12 = vmul.f32 %v978_v54, %v830_v9  ;;  %v993_v24 = vmul.f32 %v990_v61, %v853_v13  ;;  %v1072_v54 = vpop.f32.mrf.mxu0 }
 0x2ce   : > { %v1010_v25 = vpop.permute.xlu1 %1009  ;;  %v1073_v56 = vadd.f32 %v1425_v55, %v1072_v54 }
 0x2cf   : > { %v983_v19 = vadd.f32 %v981_v12, %v971_v16  ;;  %v1016_v34 = vmul.f32 %v1010_v25, %v896_v14 }
 0x2d0   : > { %v1081_v58 = vmul.f32 %v1080_v57, %v1073_v56 }
 0x2d1   : > { %v995_v27 = vadd.f32 %v993_v24, %v983_v19  ;;  %v1018_v42 = vadd.f32 %v1016_v34, %v1006_v36 }
 0x2d3   : > { %v1007_v35 = vadd.f32 %v1005_v28, %v995_v27 }
 0x2d4   : > { %v919_v26 = vpop.f32.mrf.mxu2  ;;  %v942_v29 = vpop.f32.mrf.mxu3 }
 0x2d5   : > { %v1028_v38 = vmul.f32 %v1022_v33, %v919_v26  ;;  %v1019_v43 = vadd.f32 %v1017_v37, %v1007_v35  ;;  %v1040_v48 = vmul.f32 %v1034_v40, %v942_v29  ;;  %v1075_v59 = vpop.f32.mrf.mxu0 }
 0x2d6   : > { %v1076_v62 = vadd.f32 %v1425_v55, %v1075_v59 }
 0x2d7   : > { %v1038_v39 = vpop.permute.xlu1 %1037  ;;  %v1030_v47 = vadd.f32 %v1028_v38, %v1018_v42 }
 0x2d8   : > { %v1082_v63 = vmul.f32 %v1080_v57, %v1076_v62 }
 0x2d9   : > { %v1042_v51 = vadd.f32 %v1040_v48, %v1030_v47 }
 0x2dc   : > { %v922_v41 = vpop.f32.mrf.mxu2  ;;  %v945_v45 = vpop.f32.mrf.mxu3 }
 0x2dd   : > { %v1029_v44 = vmul.f32 %v1026_v20, %v922_v41  ;;  %v1041_v46 = vmul.f32 %v1038_v39, %v945_v45 }
 0x2df   : > { %v1031_v49 = vadd.f32 %v1029_v44, %v1019_v43 }
 0x2e1   : > { %v1043_v50 = vadd.f32 %v1041_v46, %v1031_v49 }
 0x2e3   : > { %1103 = vmatpush.msra.mxu1 %v1043_v50 }
 0x2e5   : > { %1104 = vmatpush.msra.mxu1 %v1042_v51 }
 0x2e6   : > { %1296 = vmatmul.msk.f32.vlgmr.msra.gmra.mxu1 %vm446_vm1, %v1044_v52 }
 0x2ee   : > { %1297 = vmatmul.msk.f32.gmra.mxu1 %vm446_vm1, %v1045_v53 }
 0x363   : > { %v1106_v60 = vpop.f32.mrf.mxu1 }
 0x364   : > { %v1107_v61 = vadd.f32 %v1106_v60, %v1081_v58 }
 0x366   : > { %1112 = vst [vmem:[%s1716_s17] sm:$0xff] %v1107_v61 }
 0x36b   : > { %v1109_v0 = vpop.f32.mrf.mxu1 }
 0x36c   : > { %v1110_v1 = vadd.f32 %v1109_v0, %v1082_v63 }
 0x36e   : > { %1113 = vst [vmem:[%s1716_s17 + $0x8] sm:$0xff] %v1110_v1 }
 0x36f PF: > { %s1304_s20 = sshll.u32 %s1526_s15, 4  ;;  %s1953_s21 = sld [smem:[#allocation18_spill]] }
 0x370   : > { %s1127_s14 = sshll.u32 %s1716_s17, 4  ;;  %s1115_s16 = scalar_lea.sflag [#allocation7], %s385_s24  ;;  %s1128_s14 = int_to_ptr.vmem [resolvable:$true] %s1127_s14 }
 0x375   : > { %s1126_s28 = scalar_lea.hbm %s1953_s21, %s1304_s20  ;;  %s1446_s15 = scalar_lea.hbm %s1953_s21, 32 }
 0x376   : > { %s1129_s22 = sshll.u32 %s1126_s28, 4  ;;  %s1130_s22 = int_to_ptr.hbm [resolvable:$true] %s1129_s22 }
 0x377   : > { %s1440_s25 = sshra.s32 %s1130_s22, 4  ;;  %s1441_s25 = int_to_ptr.hbm [resolvable:$true] %s1440_s25 }
 0x378   : > { %s1442_s12 = scalar_lea.hbm %s1441_s25, 16  ;;  %p1447_p11 = scmp.lt.s32.totalorder %s1441_s25, %s1953_s21 }
 0x379   : > { %p1443_p7 = scmp.ne.s32.totalorder %s1441_s25, %s1442_s12  ;;  %p1448_p13 = scmp.lt.s32.totalorder %s1446_s15, %s1442_s12 }
 0x37b   : > { %p1444_p8 = pnand %p1443_p7, %p1677_p9  ;;  %p1449_p0 = por %p1448_p13, %p1447_p11 }
 0x37d   : > { %p1445_p10 = pneg %p1444_p8 }
 0x37f   : > { %p1450_p1 = pnand %p1449_p0, %p1445_p10 }
 0x381   : > { %1453 = shalt.err (!%p1450_p1)
}
 0x382   : > { %s1549_s17 = smov 128   ;;  %s1550_s24 = smov 8  }
 0x383   : > { %1311 = dma.vmem_to_hbm [thread:$0]  (%p1677_p9), %s1128_s14, 256, %s1130_s22, %s1115_s16, %s1549_s17, %s1549_s17, %s1550_s24  }
 0x384 PF: > { %p1317_p2 = scmp.ge.s32.totalorder %s1538_s18, 2  ;;  %s1144_s20 = sand.u32 1, %s1502_s30  }
 0x385   : > { %s1145_s23 = scalar_lea.sflag [#allocation7], %s1144_s20 }
 0x386   : > { %p1314_p3 = pnand %p1317_p2, %p1683_p12 }
 0x388   : > { %p1315_p4 = pneg %p1314_p3 }
 0x38a   : > { %1497 = dma.done.wait (%p1315_p4), %s1145_s23, 256  }
 0x38b   : > { %1499 = vsyncadd (%p1315_p4), %s1145_s23, 4294967040  ;;  %s22_s18 = sadd.s32 1, %s1538_s18   ;;  %s1954_s14 = sld [smem:[#allocation11_spill]] }
 0x38c   : > { %p19_p5 = scmp.ge.s32.totalorder %s22_s18, 8   ;;  %s1955_s15 = sld [smem:[#allocation12_spill]] }
 0x38d   : > { %s1956_s16 = sld [smem:[#allocation13_spill]]  ;;  %s1958_s30 = smov %s1506_s10 }
 0x38e   : > { %s1957_s17 = sld [smem:[#allocation14_spill]]  ;;  %s1959_s10 = smov %s1510_s11 }
 0x38f   : > { %s1960_s11 = smov %s1688_s7  ;;  %s1961_s12 = smov %s1518_s13 }
 0x390   : > { %s1962_s13 = smov %s1691_s19  ;;  %21 = sbr.rel (!%p19_p5) target bundleno = 11 (0xb), region = 164 }
 0x395   :  { %1151 = vsyncpa [#allocation7], 1 }
 0x396   :  { %1153 = vsyncpa [#allocation7 + $0x1], 1 }
 0x397   :  { %1154 = vsyncmov [#allocation4] }
 0x39a   :  { %s1155_s8 = vpop.sfrf %1154 }
 0x39b   :  { %p1303_p9 = scmp.ne.s32.totalorder %s1155_s8, 0 }
 0x39d   :  { %1159 = shalt.err (%p1303_p9)  }

</bundles_post_ra>
